<compile_context>
chip_gen: v7x
topology: tpu7x:2x2x1
jax: 0.10.0
libtpu: 0.0.40
codegen_flags: <defaults>
</compile_context>

<pallas_src>
import functools

import jax
import jax.numpy as jnp
import numpy as np
from jax.experimental import pallas as pl
from jax.experimental.pallas import tpu as pltpu

KERNEL_SIZE = 3  # conv1d kernel width (padding=1 -> "same" length)


def _classifier_kernel(x_ref, w1_ref, b1_ref, w2_ref, b2_ref, o_ref, acc_ref,
                       *, inv_len):
    # x_ref : (TB, Lt, K*Cin)  im2col'd input tile (batch tile x seq tile)
    # w1_ref: (K*Cin, H)       conv weights, taps folded into contraction dim
    # b1_ref: (1, H)           conv bias (f32)
    # w2_ref: (H, NC)          head linear weight
    # b2_ref: (1, NC)          head linear bias (f32)
    # o_ref : (TB, NC)         logits for this batch tile (written once)
    # acc_ref: (TB, H) f32     resident pooled-sum accumulator
    s = pl.program_id(1)

    @pl.when(s == 0)
    def _():
        acc_ref[...] = jnp.zeros_like(acc_ref)

    TB, Lt, KC = x_ref.shape
    H = w1_ref.shape[1]

    # Conv1d('same') for the whole batch tile as ONE MXU matmul:
    # batch folded into M, taps folded into the contraction dim.
    x2d = x_ref[...].reshape(TB * Lt, KC)
    h = jnp.dot(x2d, w1_ref[...], preferred_element_type=jnp.float32)  # (TB*Lt, H)
    h = jnp.maximum(h + b1_ref[...], 0.0)                               # bias + ReLU

    # Partial global-average-pool: accumulate the per-seq-tile sum.
    acc_ref[...] += jnp.sum(h.reshape(TB, Lt, H), axis=1)

    @pl.when(s == pl.num_programs(1) - 1)
    def _():
        feat = (acc_ref[...] * inv_len).astype(w2_ref.dtype)            # (TB, H)
        logits = jnp.dot(feat, w2_ref[...],
                         preferred_element_type=jnp.float32) + b2_ref[...]
        o_ref[...] = logits.astype(o_ref.dtype)


def classifier_forward(x_ncl, w1, b1, w2, b2, *,
                       batch_block=None, seq_block=None, use_bf16=False):
    """x_ncl: (B, Cin, L) float32  ->  logits (B, NC) float32."""
    B, Cin, L = x_ncl.shape
    K, _, H = w1.shape
    NC = w2.shape[1]
    pad = (K - 1) // 2

    # ---- wrapper glue (layout only; all hot compute stays in the kernel) ----
    x_nlc = jnp.transpose(x_ncl, (0, 2, 1))                        # (B, L, Cin)
    x_padded = jnp.pad(x_nlc, ((0, 0), (pad, pad), (0, 0)))        # (B, L+2p, Cin)
    # im2col: taps concatenated on the lane axis -> conv == one matmul.
    x_col = jnp.concatenate(
        [x_padded[:, k:k + L, :] for k in range(K)], axis=-1)      # (B, L, K*Cin)
    w1_col = w1.reshape(K * Cin, H)                                # tap-major rows

    # Batch tiling: whole batch per step at small B; 128-row tiles otherwise.
    TB = batch_block if batch_block is not None else min(B, 128)
    n_bt = pl.cdiv(B, TB)
    B_pad = n_bt * TB
    if B_pad != B:
        x_col = jnp.pad(x_col, ((0, B_pad - B), (0, 0), (0, 0)))

    # Sequence tiling (resident-accumulator path for long seq_len).
    Lt = seq_block if (seq_block is not None and L % seq_block == 0) else L
    n_st = L // Lt

    if use_bf16:
        # bf16 MXU operands, f32 accumulation (v6e/v7x fast path).
        x_col = x_col.astype(jnp.bfloat16)
        w1_col = w1_col.astype(jnp.bfloat16)
        w2_in = w2.astype(jnp.bfloat16)
    else:
        w2_in = w2.astype(jnp.float32)

    b1_2d = b1.reshape(1, H).astype(jnp.float32)
    b2_2d = b2.reshape(1, NC).astype(jnp.float32)

    kernel = functools.partial(_classifier_kernel, inv_len=1.0 / L)

    out = pl.pallas_call(
        kernel,
        out_shape=jax.ShapeDtypeStruct((B_pad, NC), jnp.float32),
        grid_spec=pltpu.PrefetchScalarGridSpec(
            num_scalar_prefetch=0,
            grid=(n_bt, n_st),  # batch tiles (parallel), seq tiles (arbitrary, last)
            in_specs=[
                pl.BlockSpec((TB, Lt, K * Cin), lambda b, s: (b, s, 0)),
                pl.BlockSpec((K * Cin, H), lambda b, s: (0, 0)),   # grid-invariant
                pl.BlockSpec((1, H), lambda b, s: (0, 0)),         # grid-invariant
                pl.BlockSpec((H, NC), lambda b, s: (0, 0)),        # grid-invariant
                pl.BlockSpec((1, NC), lambda b, s: (0, 0)),        # grid-invariant
            ],
            out_specs=pl.BlockSpec((TB, NC), lambda b, s: (b, 0)),
            scratch_shapes=[pltpu.VMEM((TB, H), jnp.float32)],
        ),
        compiler_params=pltpu.CompilerParams(
            dimension_semantics=("parallel", "arbitrary"),
            vmem_limit_bytes=32 * 1024 * 1024,
        ),
    )(x_col, w1_col, b1_2d, w2_in, b2_2d)

    return out[:B]


def _reference(x_ncl, w1, b1, w2, b2):
    """Pure-JAX reference matching the PyTorch semantics."""
    B, Cin, L = x_ncl.shape
    K = w1.shape[0]
    pad = (K - 1) // 2
    x_nlc = jnp.transpose(x_ncl, (0, 2, 1))
    x_pad = jnp.pad(x_nlc, ((0, 0), (pad, pad), (0, 0)))
    acc = sum(jnp.einsum('blc,ch->blh', x_pad[:, k:k + L, :], w1[k])
              for k in range(K))
    acc = jnp.maximum(acc + b1[None, None, :], 0.0)
    feat = jnp.mean(acc, axis=1)
    return feat @ w2 + b2[None, :]


if __name__ == "__main__":
    # x: (batch_size, num_lead, seq_len) -> (batch_size, num_classes)
    B, NUM_LEAD, SEQ_LEN = 2, 4, 16
    HIDDEN, NUM_CLASSES = 32, 8

    key = jax.random.PRNGKey(0)
    kx, kw1, kb1, kw2, kb2 = jax.random.split(key, 5)

    x = jax.random.normal(kx, (B, NUM_LEAD, SEQ_LEN), dtype=jnp.float32)
    w1 = jax.random.normal(kw1, (KERNEL_SIZE, NUM_LEAD, HIDDEN),
                           dtype=jnp.float32) * 0.1
    b1 = jax.random.normal(kb1, (HIDDEN,), dtype=jnp.float32) * 0.1
    w2 = jax.random.normal(kw2, (HIDDEN, NUM_CLASSES),
                           dtype=jnp.float32) * 0.1
    b2 = jax.random.normal(kb2, (NUM_CLASSES,), dtype=jnp.float32) * 0.1

    ref = jax.block_until_ready(_reference(x, w1, b1, w2, b2))

    # f32 path (exact match to reference).
    out = jax.block_until_ready(classifier_forward(x, w1, b1, w2, b2))
    np.testing.assert_allclose(np.asarray(out), np.asarray(ref),
                               rtol=1e-4, atol=1e-4)
    assert out.shape == (B, NUM_CLASSES)

    # bf16-operand / f32-accumulate fast path (v6e/v7x MXU).
    out_bf16 = jax.block_until_ready(
        classifier_forward(x, w1, b1, w2, b2, use_bf16=True))
    np.testing.assert_allclose(np.asarray(out_bf16), np.asarray(ref),
                               rtol=5e-2, atol=5e-2)

    print("KERNEL_OK")
</pallas_src>

<mosaic_0001>
module attributes {stable_mosaic.version = 11 : i64} {
  func.func @_classifier_kernel(%arg0: i32, %arg1: i32, %arg2: memref<2x16x12xf32, #tpu.memory_space<vmem>>, %arg3: memref<12x32xf32, #tpu.memory_space<vmem>>, %arg4: memref<1x32xf32, #tpu.memory_space<vmem>>, %arg5: memref<32x8xf32, #tpu.memory_space<vmem>>, %arg6: memref<1x8xf32, #tpu.memory_space<vmem>>, %arg7: memref<2x8xf32, #tpu.memory_space<vmem>>, %arg8: memref<2x32xf32, #tpu.memory_space<vmem>>) attributes {dimension_semantics = [#tpu.dimension_semantics<parallel>, #tpu.dimension_semantics<arbitrary>], iteration_bounds = array<i64: 1, 1>, scalar_prefetch = 0 : i64, scratch_operands = 1 : i64, tpu.core_type = #tpu.core_type<tc>, window_params = [{transform_indices = @transform_0, window_bounds = array<i64: 2, 16, 12>}, {pipeline_mode = #tpu.pipeline_mode<synchronous>, transform_indices = @transform_1, window_bounds = array<i64: 12, 32>}, {pipeline_mode = #tpu.pipeline_mode<synchronous>, transform_indices = @transform_2, window_bounds = array<i64: 1, 32>}, {pipeline_mode = #tpu.pipeline_mode<synchronous>, transform_indices = @transform_3, window_bounds = array<i64: 32, 8>}, {pipeline_mode = #tpu.pipeline_mode<synchronous>, transform_indices = @transform_4, window_bounds = array<i64: 1, 8>}, {transform_indices = @transform_5, window_bounds = array<i64: 2, 8>}]} {
    %c0_i32 = arith.constant 0 : i32
    %0 = arith.cmpi eq, %arg1, %c0_i32 : i32
    %1 = arith.extui %0 : i1 to i32
    %c0_i32_0 = arith.constant 0 : i32
    %2 = arith.cmpi ne, %1, %c0_i32_0 : i32
    scf.if %2 {
      %cst_15 = arith.constant 0.000000e+00 : f32
      %20 = vector.broadcast %cst_15 : f32 to vector<2x32xf32>
      %c0_16 = arith.constant 0 : index
      %c0_17 = arith.constant 0 : index
      %21 = vector.load %arg8[%c0_16, %c0_17] : memref<2x32xf32, #tpu.memory_space<vmem>>, vector<2x32xf32>
      tpu.vector_store %arg8[%c0_16, %c0_17], %20 {strides = array<i32>} : memref<2x32xf32, #tpu.memory_space<vmem>>, vector<2x32xf32>,
    } else {
    }
    %c0 = arith.constant 0 : index
    %c0_1 = arith.constant 0 : index
    %c0_2 = arith.constant 0 : index
    %3 = vector.load %arg2[%c0, %c0_1, %c0_2] : memref<2x16x12xf32, #tpu.memory_space<vmem>>, vector<2x16x12xf32>
    %4 = vector.shape_cast %3 : vector<2x16x12xf32> to vector<32x12xf32>
    %c0_3 = arith.constant 0 : index
    %c0_4 = arith.constant 0 : index
    %5 = vector.load %arg3[%c0_3, %c0_4] : memref<12x32xf32, #tpu.memory_space<vmem>>, vector<12x32xf32>
    %cst = arith.constant dense<0.000000e+00> : vector<32x32xf32>
    %6 = tpu.matmul %4, %5, %cst {dimension_numbers = #tpu.dot_dimension_numbers<[1], [0], [0], [1], [0, 0, 1, 1], [], []>} : vector<32x12xf32>, vector<12x32xf32>, vector<32x32xf32> -> vector<32x32xf32>
    %c0_5 = arith.constant 0 : index
    %c0_6 = arith.constant 0 : index
    %7 = vector.load %arg4[%c0_5, %c0_6] : memref<1x32xf32, #tpu.memory_space<vmem>>, vector<1x32xf32>
    %8 = vector.broadcast %7 : vector<1x32xf32> to vector<32x32xf32>
    %9 = arith.addf %6, %8 : vector<32x32xf32>
    %cst_7 = arith.constant 0.000000e+00 : f32
    %10 = vector.broadcast %cst_7 : f32 to vector<32x32xf32>
    %11 = arith.maximumf %9, %10 : vector<32x32xf32>
    %c0_8 = arith.constant 0 : index
    %c0_9 = arith.constant 0 : index
    %12 = vector.load %arg8[%c0_8, %c0_9] : memref<2x32xf32, #tpu.memory_space<vmem>>, vector<2x32xf32>
    %13 = vector.shape_cast %11 : vector<32x32xf32> to vector<2x16x32xf32>
    %cst_10 = arith.constant dense<0.000000e+00> : vector<2x32xf32>
    %14 = vector.multi_reduction <add>, %13, %cst_10 [1] : vector<2x16x32xf32> to vector<2x32xf32>
    %15 = arith.addf %12, %14 : vector<2x32xf32>
    %c0_11 = arith.constant 0 : index
    %c0_12 = arith.constant 0 : index
    %16 = vector.load %arg8[%c0_11, %c0_12] : memref<2x32xf32, #tpu.memory_space<vmem>>, vector<2x32xf32>
    tpu.vector_store %arg8[%c0_11, %c0_12], %15 {strides = array<i32>} : memref<2x32xf32, #tpu.memory_space<vmem>>, vector<2x32xf32>,
    %c0_i32_13 = arith.constant 0 : i32
    %17 = arith.cmpi eq, %arg1, %c0_i32_13 : i32
    %18 = arith.extui %17 : i1 to i32
    %c0_i32_14 = arith.constant 0 : i32
    %19 = arith.cmpi ne, %18, %c0_i32_14 : i32
    scf.if %19 {
      %c0_15 = arith.constant 0 : index
      %c0_16 = arith.constant 0 : index
      %20 = vector.load %arg8[%c0_15, %c0_16] : memref<2x32xf32, #tpu.memory_space<vmem>>, vector<2x32xf32>
      %cst_17 = arith.constant 6.250000e-02 : f32
      %21 = vector.broadcast %cst_17 : f32 to vector<2x32xf32>
      %22 = arith.mulf %20, %21 : vector<2x32xf32>
      %c0_18 = arith.constant 0 : index
      %c0_19 = arith.constant 0 : index
      %23 = vector.load %arg5[%c0_18, %c0_19] : memref<32x8xf32, #tpu.memory_space<vmem>>, vector<32x8xf32>
      %cst_20 = arith.constant dense<0.000000e+00> : vector<2x8xf32>
      %24 = tpu.matmul %22, %23, %cst_20 {dimension_numbers = #tpu.dot_dimension_numbers<[1], [0], [0], [1], [0, 0, 1, 1], [], []>} : vector<2x32xf32>, vector<32x8xf32>, vector<2x8xf32> -> vector<2x8xf32>
      %c0_21 = arith.constant 0 : index
      %c0_22 = arith.constant 0 : index
      %25 = vector.load %arg6[%c0_21, %c0_22] : memref<1x8xf32, #tpu.memory_space<vmem>>, vector<1x8xf32>
      %26 = vector.broadcast %25 : vector<1x8xf32> to vector<2x8xf32>
      %27 = arith.addf %24, %26 : vector<2x8xf32>
      %c0_23 = arith.constant 0 : index
      %c0_24 = arith.constant 0 : index
      %28 = vector.load %arg7[%c0_23, %c0_24] : memref<2x8xf32, #tpu.memory_space<vmem>>, vector<2x8xf32>
      tpu.vector_store %arg7[%c0_23, %c0_24], %27 {strides = array<i32>} : memref<2x8xf32, #tpu.memory_space<vmem>>, vector<2x8xf32>,
    } else {
    }
    return
  }
  func.func @transform_0(%arg0: i32, %arg1: i32) -> (i32, i32, i32) {
    %c0_i32 = arith.constant 0 : i32
    %c0_i32_0 = arith.constant 0 : i32
    return %arg0, %arg1, %c0_i32 : i32, i32, i32
  }
  func.func @transform_1(%arg0: i32, %arg1: i32) -> (i32, i32) {
    %c0_i32 = arith.constant 0 : i32
    %c0_i32_0 = arith.constant 0 : i32
    %c0_i32_1 = arith.constant 0 : i32
    return %c0_i32, %c0_i32_0 : i32, i32
  }
  func.func @transform_2(%arg0: i32, %arg1: i32) -> (i32, i32) {
    %c0_i32 = arith.constant 0 : i32
    %c0_i32_0 = arith.constant 0 : i32
    %c0_i32_1 = arith.constant 0 : i32
    return %c0_i32, %c0_i32_0 : i32, i32
  }
  func.func @transform_3(%arg0: i32, %arg1: i32) -> (i32, i32) {
    %c0_i32 = arith.constant 0 : i32
    %c0_i32_0 = arith.constant 0 : i32
    %c0_i32_1 = arith.constant 0 : i32
    return %c0_i32, %c0_i32_0 : i32, i32
  }
  func.func @transform_4(%arg0: i32, %arg1: i32) -> (i32, i32) {
    %c0_i32 = arith.constant 0 : i32
    %c0_i32_0 = arith.constant 0 : i32
    %c0_i32_1 = arith.constant 0 : i32
    return %c0_i32, %c0_i32_0 : i32, i32
  }
  func.func @transform_5(%arg0: i32, %arg1: i32) -> (i32, i32) {
    %c0_i32 = arith.constant 0 : i32
    %c0_i32_0 = arith.constant 0 : i32
    return %arg0, %c0_i32 : i32, i32
  }
}

</mosaic_0001>

<bundles_post_ra>
// kernel: tpu_custom_call.1
= control target key start
LH: loop header
LB: loop body
LE: loop exit
PB: predicated region body
PF: predicated region fallthrough
CT: control target
= control target key end

     0   :  { %vm53_vm0 = vcmask 1043456   ;;  %vm360_vm1 = vmmov 1   ;;  %vm40_vm3 = vcmask 97280   ;;  %s450_s0 = inlined_call_operand.vmem [shape: f32[2,16,12], index: 0, kind: input, shape index: {}]   ;;  %s451_s1 = inlined_call_operand.vmem [shape: f32[12,32], index: 1, kind: input, shape index: {}]   ;;  %s452_s2 = inlined_call_operand.vmem [shape: f32[1,32], index: 2, kind: input, shape index: {}]   ;;  %s453_s3 = inlined_call_operand.vmem [shape: f32[32,8], index: 3, kind: input, shape index: {}]   ;;  %s454_s4 = inlined_call_operand.vmem [shape: f32[1,8], index: 4, kind: input, shape index: {}]   ;;  %s455_s5 = inlined_call_operand.hbm [shape: f32[2,8], index: 5, kind: output, shape index: {}]  }
   0x1   :  { %v31_v0 = vld [vmem:[%s451_s1] sm:$0xff]  ;;  %v32_v1 = vld [vmem:[%s451_s1 + $0x8] sm:$0xf]  ;;  %vm320_vm2 = vmpackc.low %vm53_vm0, %vm360_vm1 }
   0x2   :  { %v27_v2 = vld [vmem:[%s450_s0] sm:$0xff]  ;;  %v319_v3 = vpack.c.bf16 %v32_v1, %v31_v0 }
   0x3   :  { %302 = vmatprep.mubr.msk.f32.mxu0 %vm40_vm3, %v27_v2 }
   0x4   :  { %10 = vsyncpa [#allocation4], 0  ;;  %321 = vmatprep.subr.msk.bf16.mxu0 %vm320_vm2, %v319_v3  ;;  %v28_v4 = vld [vmem:[%s450_s0 + $0x8] sm:$0xff]  ;;  %v29_v5 = vld [vmem:[%s450_s0 + $0x10] sm:$0xff]  ;;  %vm25_vm4 = vcmask 254976   ;;  %v361_v7 = vmov 0.0  }
   0x5   :  { %324 = vmatpush3.bf16.msk.msra.mxu0 %vm320_vm2, %v319_v3  ;;  %v30_v6 = vld [vmem:[%s450_s0 + $0x18] sm:$0xff]  ;;  %26 = vst.msk [vmem:[#allocation2] sm:$0x3] %vm25_vm4, %v361_v7  ;;  %v179_v8 = vld [vmem:[%s453_s3] sm:$0xff]  ;;  %v180_v9 = vld [vmem:[%s453_s3 + $0x8] sm:$0xff]  ;;  %v362_v11 = vmov 0.0|0.0  }
   0x6   :  { %v181_v10 = vld [vmem:[%s453_s3 + $0x10] sm:$0xff]  ;;  %325 = vmatprep.subr.bf16.mxu1 %v362_v11  ;;  %v326_v12 = vpack.c.bf16 %v180_v9, %v179_v8  ;;  %v182_v13 = vld [vmem:[%s453_s3 + $0x18] sm:$0xff]  ;;  %vm363_vm5 = vmmov 0   ;;  %v279_v15 = vld [vmem:[%s452_s2] ss:$0 sm:$0xff]  ;;  %vm147_vm6 = vcmask 261120  }
   0x7   :  { %v329_v14 = vpack.c.bf16 %v182_v13, %v181_v10  ;;  %316 = vmatprep.mubr.msk.f32.mxu1 %vm363_vm5, %v361_v7  ;;  %vm168_vm7 = vcmask 1041409   ;;  %v285_v51 = vld [vmem:[%s454_s4] ss:$0 sm:$0xff]  ;;  %s364_s13 = smov [#allocation3]   ;;  %vm263_vm8 = vcmask 58368  }
   0x8   :  { %303 = vmatmul.mubr.msk.f32.vlgmr.msra.gmra.mrb[0].mxu0 %vm40_vm3, %v28_v4  ;;  %327 = vmatpush3.bf16.msra.mxu1 %v326_v12  ;;  %s271_s14 = sshll.u32 %s364_s13, 4  ;;  %s272_s14 = int_to_ptr.vmem [resolvable:$true] %s271_s14 }
   0x9   :  { %305 = vmatprep.mubr.msk.f32.mxu0 %vm40_vm3, %v29_v5  ;;  %328 = vmatprep.subr.bf16.mxu1 %v362_v11  ;;  %s336_s15 = scalar_lea.vmem %s272_s14, 32  ;;  %p341_p1 = scmp.lt.s32.totalorder %s272_s14, %s272_s14 }
   0xa   :  { %p337_p0 = scmp.ne.s32.totalorder %s272_s14, %s336_s15  ;;  %p342_p2 = scmp.lt.s32.totalorder %s336_s15, %s336_s15 }
   0xc   :  { %306 = vmatmul.mubr.msk.f32.gmra.mrb[2].mxu0 %vm40_vm3, %v30_v6  ;;  %330 = vmatpush3.bf16.msra.mxu1 %v329_v14  ;;  %v146_v46 = vld [vmem:[#allocation2] sm:$0x3]  ;;  %p343_p3 = por %p342_p2, %p341_p1 }
   0xe   :  { %p344_p4 = pnand %p343_p3, %p337_p0 }
  0xdb   :  { %v304_v16 = vpop.f32.mrb[0].mxu0 }
  0xdc   :  { %v129_v17 = vadd.f32 %v304_v16, %v279_v15  ;;  %v123_v18 = vpop.f32.mrb[1].mxu0 }
  0xdd   :  { %v124_v19 = vadd.f32 %v279_v15, %v123_v18 }
  0xde   :  { %v143_v20 = vmax.f32 %v129_v17, 0.0 }
  0xdf   :  { %v142_v21 = vmax.f32 %v124_v19, 0.0  ;;  %v307_v22 = vpop.f32.mrb[2].mxu0 }
  0xe0   :  { %v149_v23 = vsel %vm147_vm6, %v143_v20, 0.0  ;;  %v139_v24 = vadd.f32 %v307_v22, %v279_v15  ;;  %v133_v25 = vpop.f32.mrb[3].mxu0 }
  0xe1   :  { %v148_v26 = vsel %vm147_vm6, %v142_v21, 0.0  ;;  %v134_v27 = vadd.f32 %v279_v15, %v133_v25 }
  0xe2   :  { %v150_v28 = vadd.f32 %v149_v23, %v148_v26  ;;  %v145_v29 = vmax.f32 %v139_v24, 0.0 }
  0xe3   :  { %v144_v30 = vmax.f32 %v134_v27, 0.0 }
  0xe4   :  { %v151_v31 = vrot.slane %v150_v28, 4  ;;  %v158_v32 = vsel %vm147_vm6, %v145_v29, 0.0 }
  0xe5   :  { %v157_v33 = vsel %vm147_vm6, %v144_v30, 0.0 }
  0xe6   :  { %v152_v34 = vadd.f32 %v151_v31, %v150_v28  ;;  %v159_v35 = vadd.f32 %v158_v32, %v157_v33 }
  0xe8   :  { %v153_v36 = vrot.slane %v152_v34, 2  ;;  %v160_v37 = vrot.slane %v159_v35, 4 }
  0xea   :  { %v154_v38 = vadd.f32 %v153_v36, %v152_v34  ;;  %v161_v39 = vadd.f32 %v160_v37, %v159_v35 }
  0xec   :  { %v162_v40 = vrot.slane %v161_v39, 2  ;;  %v155_v41 = vrot.slane %v154_v38, 1 }
  0xee   :  { %v163_v42 = vadd.f32 %v162_v40, %v161_v39  ;;  %v156_v44 = vadd.f32 %v155_v41, %v154_v38 }
  0xf0   :  { %v164_v43 = vrot.slane %v163_v42, 1 }
  0xf2   :  { %v165_v45 = vadd.f32 %v164_v43, %v163_v42 }
  0xf4   :  { %v169_v47 = vsel %vm168_vm7, %v165_v45, %v156_v44 }
  0xf5   :  { %v171_v48 = vadd.f32 %v169_v47, %v146_v46 }
  0xf7   :  { %173 = vst.msk [vmem:[#allocation2] sm:$0x3] %vm25_vm4, %v171_v48 }
  0xfe   :  { %v177_v49 = vld [vmem:[#allocation2] sm:$0x3] }
  0xff   :  { %v178_v50 = vmul.f32 0.0625, %v177_v49 }
 0x101   :  { %317 = vmatmul.mubr.msk.f32.vlgmr.msra.gmra.mrb[0].mxu1 %vm147_vm6, %v178_v50 }
 0x1d4   :  { %v259_v52 = vpop.f32.mrb[0].mxu1 }
 0x1d5   :  { %v260_v53 = vadd.f32 %v285_v51, %v259_v52  ;;  %v318_v54 = vpop.f32.mrb[1].mxu1 }
 0x1d7   :  { %264 = vst.msk [vmem:[#allocation3] sm:$0x3] %vm263_vm8, %v260_v53 }
 0x1d8   :  { %347 = shalt.err (!%p344_p4)
}
 0x1d9   :  { %s348_s18 = scalar_lea.hbm %s455_s5, 32 }
 0x1da   :  { %p349_p5 = scmp.ne.s32.totalorder %s455_s5, %s348_s18  ;;  %p352_p6 = scmp.lt.u32.totalorder %s348_s18, %s455_s5 }
 0x1dc   :  { %p354_p7 = pnand %p352_p6, %p349_p5 }
 0x1de   :  { %357 = shalt.err (!%p354_p7)
}
 0x1df   :  { %274 = dma.vmem_to_hbm [thread:$0]  %s272_s14, 32, %s455_s5, [#allocation4]  }
 0x1e0   :  { %358 = dma.done.wait [#allocation4], 32  }
 0x1e1   :  { %359 = vsyncadd [#allocation4], 4294967264 }
 0x1e2   :  { %278 = vsyncpa [#allocation4], 1 }

</bundles_post_ra>
